<compile_context>
chip_gen: v7x
topology: tpu7x:2x2x1
jax: 0.10.0
libtpu: 0.0.40
codegen_flags: <defaults>
</compile_context>

<pallas_src>
import functools

import jax
import jax.numpy as jnp
from jax.experimental import pallas as pl
from jax.experimental.pallas import tpu as pltpu

LANE = 128
SUBLANE = 8
CHUNK_ROWS = 128                 # 64 KiB f32 per input per inner-loop step (fits in vregs)
MAX_BLOCK_ROWS = 4096            # 2 MiB f32 per input per pipeline buffer (v5e-safe)
TARGET_BLOCKS_PER_SPLIT = 4      # keep >= 3-4 blocks in flight per core for DMA overlap
MIN_PALLAS_ELEMS = 1 << 20       # below this, fused XLA reduction beats kernel overhead


def _round_up(x, m):
    return ((x + m - 1) // m) * m


def _num_tensorcores():
    """2-way core split only on v7x (2 TensorCores/chip); v5e/v6e are single-TC."""
    try:
        kind = jax.devices()[0].device_kind.lower()
    except Exception:
        return 1
    return 2 if ("v7" in kind or "7x" in kind) else 1


def _bce_terms_f32(x, t):
    """Numerically stable BCE-with-logits terms: max(x,0) - x*t + log1p(exp(-|x|))."""
    x = x.astype(jnp.float32)
    t = t.astype(jnp.float32)
    return jnp.maximum(x, 0.0) - x * t + jnp.log1p(jnp.exp(-jnp.abs(x)))


def _bce_sum_kernel(x_ref, t_ref, out_ref, acc_ref, *, block_rows, chunk_rows,
                    rows, inv_n, needs_mask, blocks_per_split):
    """Streams the block in chunk_rows-row chunks, folding the BCE terms into an
    (8,128) VMEM f32 accumulator with pure VPU adds (no per-step cross-lane reduce,
    no large intermediates).  The mean's 1/N scaling is fused into the epilogue."""
    i = pl.program_id(1)

    @pl.when(i == 0)
    def _init():
        acc_ref[...] = jnp.zeros_like(acc_ref)

    num_chunks = block_rows // chunk_rows
    if needs_mask:
        # Global row offset of this block; only the very last block can be partial.
        block_row0 = (pl.program_id(0) * blocks_per_split + i) * block_rows

    def chunk_body(k, carry):
        off = pl.multiple_of(k * chunk_rows, chunk_rows)
        x = x_ref[pl.ds(off, chunk_rows), :]      # narrow dtype load; upcast below
        t = t_ref[pl.ds(off, chunk_rows), :]
        per = _bce_terms_f32(x, t)
        if needs_mask:
            rid = jax.lax.broadcasted_iota(jnp.int32, per.shape, 0) + (block_row0 + off)
            per = jnp.where(rid < rows, per, 0.0)  # zero out rows past the true end
        acc_ref[...] += jnp.sum(per.reshape(chunk_rows // SUBLANE, SUBLANE, LANE), axis=0)
        return carry

    jax.lax.fori_loop(0, num_chunks, chunk_body, 0)

    @pl.when(i == pl.num_programs(1) - 1)
    def _epilogue():
        out_ref[0] = acc_ref[...] * inv_n


@jax.jit
def _bce_pallas(logits, target):
    """Pallas streaming-reduction path. Requires logits.size % 1024 == 0."""
    n = logits.size
    rows = n // LANE
    # Layout-preserving reshape (no HBM copy) to a lane-dense slab.
    x2d = logits.reshape(rows, LANE)
    t2d = target.reshape(rows, LANE)

    num_splits = _num_tensorcores()
    if rows <= MAX_BLOCK_ROWS:
        # Whole array is one block (block == full dims, legal for any dtype).
        block_rows = rows
        num_splits = 1
        blocks_per_split = 1
    else:
        block_rows = min(MAX_BLOCK_ROWS,
                         _round_up(pl.cdiv(rows, num_splits * TARGET_BLOCKS_PER_SPLIT),
                                   CHUNK_ROWS))
        total_blocks = pl.cdiv(rows, block_rows)
        if total_blocks % num_splits:
            num_splits = 1          # never create fully out-of-bounds blocks on the split axis
        blocks_per_split = total_blocks // num_splits

    needs_mask = (rows % block_rows) != 0   # only the last block can be partial (row-granular)
    chunk_rows = CHUNK_ROWS if (block_rows % CHUNK_ROWS == 0) else block_rows

    kernel = functools.partial(
        _bce_sum_kernel, block_rows=block_rows, chunk_rows=chunk_rows, rows=rows,
        inv_n=1.0 / float(n), needs_mask=needs_mask, blocks_per_split=blocks_per_split)

    partials = pl.pallas_call(
        kernel,
        out_shape=jax.ShapeDtypeStruct((num_splits, SUBLANE, LANE), jnp.float32),
        grid_spec=pltpu.PrefetchScalarGridSpec(
            num_scalar_prefetch=0,
            grid=(num_splits, blocks_per_split),
            in_specs=[
                # TODO(synk): if xprof still shows exposed DMA at step boundaries, add
                # pipeline_mode=pl.Buffered(3) here (+1 block of VMEM per input).
                pl.BlockSpec((block_rows, LANE), lambda c, i: (c * blocks_per_split + i, 0)),
                pl.BlockSpec((block_rows, LANE), lambda c, i: (c * blocks_per_split + i, 0)),
            ],
            out_specs=pl.BlockSpec((1, SUBLANE, LANE), lambda c, i: (c, 0, 0)),
            scratch_shapes=[pltpu.VMEM((SUBLANE, LANE), jnp.float32)],
        ),
        compiler_params=pltpu.CompilerParams(
            dimension_semantics=("parallel", "arbitrary"),
        ),
    )(x2d, t2d)

    # Tiny final reduction of the per-core (8,128) partials; 1/N already applied.
    return jnp.sum(partials)


@jax.jit
def _bce_reference(logits, target):
    """Fused-XLA fallback (small or ragged tensors)."""
    return jnp.mean(_bce_terms_f32(logits, target))


def bce_with_logits_mean(logits, target, *, min_pallas_elems=MIN_PALLAS_ELEMS):
    """BCEWithLogitsLoss with 'mean' reduction.

    Large, nicely shaped tensors (size % 1024 == 0) stream through the Pallas kernel in
    their native dtypes with zero extra HBM copies; small or ragged tensors use a fused
    XLA reduction (which avoids the copy a pad-to-lane-dense layout would require).
    """
    assert logits.shape == target.shape
    n = logits.size
    if (n % (SUBLANE * LANE) != 0) or (n < min_pallas_elems):
        return _bce_reference(logits, target)
    return _bce_pallas(logits, target)


class MultiTermLoss:
    """JAX/Pallas re-implementation of MultiTermLoss (forward pass only).

    Only the 'ce' term (BCEWithLogitsLoss on (logits, target)) is supported, mirroring
    what `get_loss_args` implements in the reference.
    """

    def __init__(self, losses, weights, *, min_pallas_elems=MIN_PALLAS_ELEMS):
        assert len(losses) == len(weights)
        for name in losses:
            assert name == "ce", f"unsupported loss term: {name}"
        self.losses = dict(losses)
        self.weights = dict(weights)
        self._min_pallas_elems = min_pallas_elems

    def __call__(self, **kwargs):
        # Accumulate in f32 (avoid silent bf16 downcast of the f32 loss), then cast to
        # the logits dtype to match `logits.new_zeros(1)` semantics.
        total_loss = jnp.zeros((1,), dtype=jnp.float32)
        losses = {}
        for name in self.losses:
            # NOTE: reference get_loss_args indexes kwargs[''] (a bug); we use 'target'.
            loss = bce_with_logits_mean(kwargs["logits"], kwargs["target"],
                                        min_pallas_elems=self._min_pallas_elems)
            total_loss = total_loss + jnp.float32(self.weights[name]) * loss
            losses[name] = jax.lax.stop_gradient(loss)   # .detach()
        return total_loss.astype(kwargs["logits"].dtype), losses


if __name__ == "__main__":
    key = jax.random.PRNGKey(0)
    k1, k2, k3, k4 = jax.random.split(key, 4)

    # NCHW logits/targets: batch=2, channels=4, spatial=16x16 -> 2048 elements.
    logits = jax.random.normal(k1, (2, 4, 16, 16), dtype=jnp.float32)
    target = (jax.random.uniform(k2, (2, 4, 16, 16)) > 0.5).astype(jnp.float32)

    # min_pallas_elems=0 forces the Pallas kernel path (the default threshold routes
    # tensors this small to the fused-XLA fast path).
    model = MultiTermLoss(losses={"ce": "BCEWithLogitsLoss"}, weights={"ce": 1.0},
                          min_pallas_elems=0)
    total_loss, per_term = model(logits=logits, target=target)
    total_loss = jax.block_until_ready(total_loss)
    per_term = jax.block_until_ready(per_term)

    ref = jnp.mean(_bce_terms_f32(logits, target))
    assert total_loss.shape == (1,)
    assert jnp.allclose(total_loss[0], ref, atol=1e-5, rtol=1e-5)
    assert jnp.allclose(per_term["ce"], ref, atol=1e-5, rtol=1e-5)

    # Second check: a larger slab exercises the chunked in-kernel reduction, with bf16
    # inputs streamed at their narrow dtype (the kernel upcasts per chunk).
    logits2 = jax.random.normal(k3, (2, 4, 128, 128), dtype=jnp.bfloat16)
    target2 = (jax.random.uniform(k4, (2, 4, 128, 128)) > 0.5).astype(jnp.bfloat16)
    out2 = jax.block_until_ready(
        bce_with_logits_mean(logits2, target2, min_pallas_elems=0))
    ref2 = jnp.mean(_bce_terms_f32(logits2, target2))
    assert jnp.allclose(out2, ref2, atol=1e-5, rtol=1e-5)

    print("KERNEL_OK")
</pallas_src>

<mosaic_0001>
module attributes {stable_mosaic.version = 11 : i64} {
  func.func @_bce_sum_kernel(%arg0: i32, %arg1: i32, %arg2: memref<16x128xf32, #tpu.memory_space<vmem>>, %arg3: memref<16x128xf32, #tpu.memory_space<vmem>>, %arg4: memref<1x8x128xf32, #tpu.memory_space<vmem>>, %arg5: memref<8x128xf32, #tpu.memory_space<vmem>>) attributes {dimension_semantics = [#tpu.dimension_semantics<parallel>, #tpu.dimension_semantics<arbitrary>], iteration_bounds = array<i64: 1, 1>, scalar_prefetch = 0 : i64, scratch_operands = 1 : i64, tpu.core_type = #tpu.core_type<tc>, window_params = [{transform_indices = @transform_0, window_bounds = array<i64: 16, 128>}, {transform_indices = @transform_1, window_bounds = array<i64: 16, 128>}, {transform_indices = @transform_2, window_bounds = array<i64: 1, 8, 128>}]} {
    %c0_i32 = arith.constant 0 : i32
    %0 = arith.cmpi eq, %arg1, %c0_i32 : i32
    %1 = arith.extui %0 : i1 to i32
    %c0_i32_0 = arith.constant 0 : i32
    %2 = arith.cmpi ne, %1, %c0_i32_0 : i32
    scf.if %2 {
      %cst_11 = arith.constant 0.000000e+00 : f32
      %27 = vector.broadcast %cst_11 : f32 to vector<8x128xf32>
      %c0_12 = arith.constant 0 : index
      %c0_13 = arith.constant 0 : index
      %28 = vector.load %arg5[%c0_12, %c0_13] : memref<8x128xf32, #tpu.memory_space<vmem>>, vector<8x128xf32>
      tpu.vector_store %arg5[%c0_12, %c0_13], %27 {strides = array<i32>} : memref<8x128xf32, #tpu.memory_space<vmem>>, vector<8x128xf32>,
    } else {
    }
    %c0_i32_1 = arith.constant 0 : i32
    %c16_i32 = arith.constant 16 : i32
    %3 = arith.muli %c0_i32_1, %c16_i32 : i32
    %4 = tpu.assume_multiple %3, 16 : i32
    %5 = arith.index_cast %4 : i32 to index
    %c0 = arith.constant 0 : index
    %6 = vector.load %arg2[%5, %c0] : memref<16x128xf32, #tpu.memory_space<vmem>>, vector<16x128xf32>
    %7 = arith.index_cast %4 : i32 to index
    %c0_2 = arith.constant 0 : index
    %8 = vector.load %arg3[%7, %c0_2] : memref<16x128xf32, #tpu.memory_space<vmem>>, vector<16x128xf32>
    %cst = arith.constant 0.000000e+00 : f32
    %9 = vector.broadcast %cst : f32 to vector<16x128xf32>
    %10 = arith.maximumf %6, %9 : vector<16x128xf32>
    %11 = arith.mulf %6, %8 : vector<16x128xf32>
    %12 = arith.subf %10, %11 : vector<16x128xf32>
    %13 = math.absf %6 : vector<16x128xf32>
    %cst_3 = arith.constant 0.000000e+00 : f32
    %14 = vector.broadcast %cst_3 : f32 to vector<16x128xf32>
    %15 = arith.subf %14, %13 : vector<16x128xf32>
    %16 = math.exp %15 : vector<16x128xf32>
    %17 = math.log1p %16 : vector<16x128xf32>
    %18 = arith.addf %12, %17 : vector<16x128xf32>
    %c0_4 = arith.constant 0 : index
    %c0_5 = arith.constant 0 : index
    %19 = vector.load %arg5[%c0_4, %c0_5] : memref<8x128xf32, #tpu.memory_space<vmem>>, vector<8x128xf32>
    %20 = vector.shape_cast %18 : vector<16x128xf32> to vector<2x8x128xf32>
    %cst_6 = arith.constant dense<0.000000e+00> : vector<8x128xf32>
    %21 = vector.multi_reduction <add>, %20, %cst_6 [0] : vector<2x8x128xf32> to vector<8x128xf32>
    %22 = arith.addf %19, %21 : vector<8x128xf32>
    %c0_7 = arith.constant 0 : index
    %c0_8 = arith.constant 0 : index
    %23 = vector.load %arg5[%c0_7, %c0_8] : memref<8x128xf32, #tpu.memory_space<vmem>>, vector<8x128xf32>
    tpu.vector_store %arg5[%c0_7, %c0_8], %22 {strides = array<i32>} : memref<8x128xf32, #tpu.memory_space<vmem>>, vector<8x128xf32>,
    %c1_i32 = arith.constant 1 : i32
    %c0_i32_9 = arith.constant 0 : i32
    %24 = arith.cmpi eq, %arg1, %c0_i32_9 : i32
    %25 = arith.extui %24 : i1 to i32
    %c0_i32_10 = arith.constant 0 : i32
    %26 = arith.cmpi ne, %25, %c0_i32_10 : i32
    scf.if %26 {
      %c0_11 = arith.constant 0 : index
      %c0_12 = arith.constant 0 : index
      %27 = vector.load %arg5[%c0_11, %c0_12] : memref<8x128xf32, #tpu.memory_space<vmem>>, vector<8x128xf32>
      %cst_13 = arith.constant 4.8828125E-4 : f32
      %28 = vector.broadcast %cst_13 : f32 to vector<8x128xf32>
      %29 = arith.mulf %27, %28 : vector<8x128xf32>
      %c0_14 = arith.constant 0 : index
      %c0_15 = arith.constant 0 : index
      %c0_16 = arith.constant 0 : index
      %30 = vector.load %arg4[%c0_14, %c0_15, %c0_16] : memref<1x8x128xf32, #tpu.memory_space<vmem>>, vector<1x8x128xf32>
      %31 = vector.shape_cast %30 : vector<1x8x128xf32> to vector<8x128xf32>
      %32 = vector.shape_cast %29 : vector<8x128xf32> to vector<1x8x128xf32>
      tpu.vector_store %arg4[%c0_14, %c0_15, %c0_16], %32 {strides = array<i32>} : memref<1x8x128xf32, #tpu.memory_space<vmem>>, vector<1x8x128xf32>,
    } else {
    }
    return
  }
  func.func @transform_0(%arg0: i32, %arg1: i32) -> (i32, i32) {
    %c1_i32 = arith.constant 1 : i32
    %0 = arith.muli %arg0, %c1_i32 : i32
    %1 = arith.addi %0, %arg1 : i32
    %c0_i32 = arith.constant 0 : i32
    %c0_i32_0 = arith.constant 0 : i32
    return %1, %c0_i32 : i32, i32
  }
  func.func @transform_1(%arg0: i32, %arg1: i32) -> (i32, i32) {
    %c1_i32 = arith.constant 1 : i32
    %0 = arith.muli %arg0, %c1_i32 : i32
    %1 = arith.addi %0, %arg1 : i32
    %c0_i32 = arith.constant 0 : i32
    %c0_i32_0 = arith.constant 0 : i32
    return %1, %c0_i32 : i32, i32
  }
  func.func @transform_2(%arg0: i32, %arg1: i32) -> (i32, i32, i32) {
    %c0_i32 = arith.constant 0 : i32
    %c0_i32_0 = arith.constant 0 : i32
    %c0_i32_1 = arith.constant 0 : i32
    return %arg0, %c0_i32, %c0_i32_0 : i32, i32, i32
  }
}

</mosaic_0001>

<bundles_post_ra>
// kernel: _bce_pallas.1
= control target key start
LH: loop header
LB: loop body
LE: loop exit
PB: predicated region body
PF: predicated region fallthrough
CT: control target
= control target key end

     0   :  { %s162_s0 = inlined_call_operand.vmem [shape: f32[16,128], index: 0, kind: input, shape index: {}]   ;;  %s163_s1 = inlined_call_operand.vmem [shape: f32[16,128], index: 1, kind: input, shape index: {}]   ;;  %s164_s2 = inlined_call_operand.vmem [shape: f32[1,8,128], index: 2, kind: output, shape index: {}]  }
   0x1   :  { %v60_v0 = vld [vmem:[%s162_s0] sm:$0xff]  ;;  %v61_v1 = vld [vmem:[%s162_s0 + $0x8] sm:$0xff] }
   0x2   :  { %v70_v2 = vand.u32 2147483647, %v60_v0  ;;  %v71_v3 = vand.u32 2147483647, %v61_v1  ;;  %v62_v14 = vld [vmem:[%s163_s1] sm:$0xff]  ;;  %v63_v15 = vld [vmem:[%s163_s1 + $0x8] sm:$0xff] }
   0x3   :  { %v64_v17 = vmax.f32 %v60_v0, 0.0  ;;  %v66_v18 = vmul.f32 %v62_v14, %v60_v0  ;;  %v65_v21 = vmax.f32 %v61_v1, 0.0  ;;  %v67_v22 = vmul.f32 %v63_v15, %v61_v1 }
   0x4   :  { %v72_v4 = vsub.f32 0.0, %v70_v2  ;;  %v73_v5 = vsub.f32 0.0, %v71_v3 }
   0x5   :  { %v68_v26 = vsub.f32 %v64_v17, %v66_v18  ;;  %v69_v29 = vsub.f32 %v65_v21, %v67_v22 }
   0x6   :  { %v74_v6 = vmul.f32 1.442695, %v72_v4  ;;  %v76_v7 = vmul.f32 1.442695, %v73_v5 }
   0x8   :  { %124 = vpow2.f32 %v74_v6 }
   0x9   :  { %126 = vpow2.f32 %v76_v7 }
  0x12   :  { %v125_v8 = vpop.eup %124 }
  0x13   :  { %v127_v9 = vpop.eup %126  ;;  %v78_v10 = vadd.f32 1.0, %v125_v8  ;;  %v81_v12 = vmul.f32 -0.5, %v125_v8  ;;  %v84_v19 = vand.u32 2147483647, %v125_v8 }
  0x14   :  { %v87_v11 = vadd.f32 1.0, %v127_v9  ;;  %v90_v13 = vmul.f32 -0.5, %v127_v9  ;;  %v93_v23 = vand.u32 2147483647, %v127_v9 }
  0x15   :  { %128 = vlog2.f32 %v78_v10  ;;  %v82_v16 = vadd.f32 1.0, %v81_v12  ;;  %vm85_vm0 = vcmp.lt.f32.partialorder %v84_v19, 0.0004427343 }
  0x16   :  { %130 = vlog2.f32 %v87_v11  ;;  %v91_v20 = vadd.f32 1.0, %v90_v13  ;;  %vm94_vm1 = vcmp.lt.f32.partialorder %v93_v23, 0.0004427343 }
  0x17   :  { %v83_v24 = vmul.f32 %v125_v8, %v82_v16 }
  0x18   :  { %v92_v27 = vmul.f32 %v127_v9, %v91_v20 }
  0x1f   :  { %v129_v25 = vpop.eup %128 }
  0x20   :  { %v131_v28 = vpop.eup %130  ;;  %v80_v30 = vmul.f32 0.6931472, %v129_v25 }
  0x21   :  { %v89_v31 = vmul.f32 0.6931472, %v131_v28 }
  0x22   :  { %v86_v32 = vsel %vm85_vm0, %v83_v24, %v80_v30 }
  0x23   :  { %v95_v33 = vsel %vm94_vm1, %v92_v27, %v89_v31  ;;  %v96_v34 = vadd.f32 %v86_v32, %v68_v26 }
  0x24   :  { %v97_v35 = vadd.f32 %v95_v33, %v69_v29 }
  0x26   :  { %v99_v36 = vadd.f32 %v97_v35, %v96_v34 }
  0x28   :  { %v106_v37 = vmul.f32 0.00048828125, %v99_v36 }
  0x2a   :  { %107 = vst [vmem:[%s164_s2] sm:$0xff] %v106_v37 }

</bundles_post_ra>
